<compile_context>
chip_gen: v7x
topology: tpu7x:2x2x1
jax: 0.10.0
libtpu: 0.0.40
codegen_flags: <defaults>
</compile_context>

<pallas_src>
import functools

import jax
import jax.numpy as jnp
from jax import lax
from jax.experimental import pallas as pl
from jax.experimental.pallas import tpu as pltpu


LANE = 128
VMEM_LIMIT = 32 * 1024 * 1024


def _round_up(x, m):
    return ((x + m - 1) // m) * m


def _pad2d(a, rows, cols):
    pr, pc = rows - a.shape[0], cols - a.shape[1]
    if pr or pc:
        a = jnp.pad(a, ((0, pr), (0, pc)))
    return a


def _choose_tiles(n, target=512):
    """Pick (n_pad, tm, tk): pad nodes up to the tile size, tiles up to `target`."""
    n_pad = _round_up(n, LANE)
    if n_pad > target:
        n_pad = _round_up(n_pad, target)   # never fall back to 128-wide tiles
        tile = target
    else:
        tile = n_pad
    tm = tk = tile
    # v7x megacore: keep >= 2 row tiles when possible so the 'parallel' axis
    # shards across both TensorCores (harmless on single-TC v5e/v6e).
    if n_pad // tm < 2:
        for cand in (256, 128):
            if n_pad > cand and n_pad % cand == 0:
                tm = cand
                break
    return n_pad, tm, tk


def _can_fuse_all(n_pad, fin_pad):
    """Whole-graph single-kernel path: everything VMEM-resident (gate conservatively)."""
    adj_b = n_pad * n_pad * 2            # bf16 adj
    x_b = n_pad * fin_pad * 4            # f32 features
    z_b = 3 * n_pad * LANE * 4           # f32 intermediates
    return 2 * (adj_b + x_b) + z_b <= 24 * 1024 * 1024


# ---------------------------------------------------------------------------
# Per-layer fused kernel:  out = adj @ act(x @ W^T)
#   grid = (row tiles i [parallel], reduction tiles k over adj columns [arbitrary])
#   support block for adj columns k is recomputed per (i, k) from x_k and W.
# ---------------------------------------------------------------------------
def _layer_kernel(x_ref, w_ref, adj_ref, out_ref, acc_ref, *, active, tk, x_resident):
    k = pl.program_id(1)

    @pl.when(k == 0)
    def _():
        acc_ref[...] = jnp.zeros_like(acc_ref)

    if x_resident:
        off = pl.multiple_of(k * tk, LANE)
        x_blk = x_ref[pl.ds(off, tk), :]
    else:
        x_blk = x_ref[...]

    # support_k = act(x_k @ W^T); W kept in PyTorch [out, in] layout.
    s = lax.dot_general(
        x_blk.astype(jnp.bfloat16), w_ref[...],
        dimension_numbers=(((1,), (1,)), ((), ())),
        preferred_element_type=jnp.float32,
    )
    if active:
        s = jnp.tanh(s)

    acc_ref[...] += jnp.dot(
        adj_ref[...], s.astype(jnp.bfloat16), preferred_element_type=jnp.float32
    )

    @pl.when(k == pl.num_programs(1) - 1)
    def _():
        out_ref[...] = acc_ref[...].astype(out_ref.dtype)


def _fused_layer(x_p, w_p, adj_p, *, active, tm, tk, out_dtype=jnp.float32):
    n_pad, fin_pad = x_p.shape
    f_out_pad = w_p.shape[0]

    # Keep the (small) feature matrix fully VMEM-resident when it fits; the
    # constant block index means Pallas DMAs it from HBM only once.
    x_resident = n_pad * fin_pad * x_p.dtype.itemsize <= 4 * 1024 * 1024
    if x_resident:
        x_spec = pl.BlockSpec((n_pad, fin_pad), lambda i, k: (0, 0))
    else:
        x_spec = pl.BlockSpec((tk, fin_pad), lambda i, k: (k, 0))

    kernel = functools.partial(
        _layer_kernel, active=active, tk=tk, x_resident=x_resident)

    return pl.pallas_call(
        kernel,
        out_shape=jax.ShapeDtypeStruct((n_pad, f_out_pad), out_dtype),
        grid=(n_pad // tm, n_pad // tk),
        in_specs=[
            x_spec,
            pl.BlockSpec((f_out_pad, fin_pad), lambda i, k: (0, 0)),   # W (resident)
            pl.BlockSpec((tm, tk), lambda i, k: (i, k)),               # adj (streamed)
        ],
        out_specs=pl.BlockSpec((tm, f_out_pad), lambda i, k: (i, 0)),
        scratch_shapes=[pltpu.VMEM((tm, f_out_pad), jnp.float32)],
        compiler_params=pltpu.CompilerParams(
            dimension_semantics=("parallel", "arbitrary"),
            vmem_limit_bytes=VMEM_LIMIT,
        ),
    )(x_p, w_p, adj_p)


# ---------------------------------------------------------------------------
# Whole-encoder fused kernel (small graphs): adj read from HBM once, all three
# layers computed against the VMEM-resident copy.
# ---------------------------------------------------------------------------
def _all_fused_kernel(x_ref, w1_ref, w2_ref, w3_ref, adj_ref, out_ref):
    adj = adj_ref[...]

    def layer(z, w_ref, active):
        s = lax.dot_general(
            z.astype(jnp.bfloat16), w_ref[...],
            dimension_numbers=(((1,), (1,)), ((), ())),
            preferred_element_type=jnp.float32,
        )
        if active:
            s = jnp.tanh(s)
        return jnp.dot(adj, s.astype(jnp.bfloat16),
                       preferred_element_type=jnp.float32)

    z = layer(x_ref[...], w1_ref, True)
    z = layer(z, w2_ref, True)
    z = layer(z, w3_ref, False)
    out_ref[...] = z.astype(out_ref.dtype)


def _all_layers_fused(x_p, w1_p, w2_p, w3_p, adj_p, out_dtype=jnp.float32):
    n_pad = x_p.shape[0]
    f3_pad = w3_p.shape[0]

    def full_spec(shape):
        return pl.BlockSpec(shape, lambda i: (0,) * len(shape))

    return pl.pallas_call(
        _all_fused_kernel,
        out_shape=jax.ShapeDtypeStruct((n_pad, f3_pad), out_dtype),
        grid=(1,),
        in_specs=[
            full_spec(x_p.shape),
            full_spec(w1_p.shape),
            full_spec(w2_p.shape),
            full_spec(w3_p.shape),
            full_spec(adj_p.shape),
        ],
        out_specs=full_spec((n_pad, f3_pad)),
        compiler_params=pltpu.CompilerParams(
            dimension_semantics=("arbitrary",),
            vmem_limit_bytes=VMEM_LIMIT,
        ),
    )(x_p, w1_p, w2_p, w3_p, adj_p)


# ---------------------------------------------------------------------------
# Forward + one-time input preparation
# ---------------------------------------------------------------------------
def prepare_igae_inputs(x, adj, params):
    """One-time pad/cast (hoisted out of the jitted forward)."""
    n, n_input = x.shape
    n_pad, tm, tk = _choose_tiles(n)
    fin_pad = _round_up(n_input, LANE)
    f1_pad = _round_up(params["w1"].shape[0], LANE)
    f2_pad = _round_up(params["w2"].shape[0], LANE)
    f3_pad = _round_up(params["w3"].shape[0], LANE)

    bf16 = jnp.bfloat16
    x_p = _pad2d(x, n_pad, fin_pad).astype(jnp.float32)
    adj_p = _pad2d(adj, n_pad, n_pad).astype(bf16)          # padded/cast ONCE
    w1_p = _pad2d(params["w1"], f1_pad, fin_pad).astype(bf16)
    w2_p = _pad2d(params["w2"], f2_pad, f1_pad).astype(bf16)
    w3_p = _pad2d(params["w3"], f3_pad, f2_pad).astype(bf16)
    return x_p, adj_p, (w1_p, w2_p, w3_p), (n_pad, tm, tk)


def igae_encoder_forward(x_p, adj_p, w1_p, w2_p, w3_p, *, n, f3, tm, tk, fuse_all):
    if fuse_all:
        z = _all_layers_fused(x_p, w1_p, w2_p, w3_p, adj_p)
    else:
        z = _fused_layer(x_p, w1_p, adj_p, active=True, tm=tm, tk=tk)
        z = _fused_layer(z, w2_p, adj_p, active=True, tm=tm, tk=tk)
        z = _fused_layer(z, w3_p, adj_p, active=False, tm=tm, tk=tk)
    return z[:n, :f3]


# ---------------------------------------------------------------------------
# Deterministic parameter init (xavier_uniform, PyTorch [out, in] layout)
# ---------------------------------------------------------------------------
def xavier_uniform(key, out_features, in_features, dtype=jnp.float32):
    bound = (6.0 / (in_features + out_features)) ** 0.5
    return jax.random.uniform(
        key, (out_features, in_features), dtype=dtype, minval=-bound, maxval=bound
    )


def init_igae_encoder(key, gae_n_enc_1, gae_n_enc_2, gae_n_enc_3, n_input):
    k1, k2, k3 = jax.random.split(key, 3)
    return {
        "w1": xavier_uniform(k1, gae_n_enc_1, n_input),
        "w2": xavier_uniform(k2, gae_n_enc_2, gae_n_enc_1),
        "w3": xavier_uniform(k3, gae_n_enc_3, gae_n_enc_2),
    }


# ---------------------------------------------------------------------------
if __name__ == "__main__":
    def make_inputs(key, n, n_input):
        k_x, k_adj = jax.random.split(key)
        x = jax.random.normal(k_x, (n, n_input), dtype=jnp.float32)
        a = jax.random.uniform(k_adj, (n, n), dtype=jnp.float32)
        a = (a + a.T) * 0.5 + jnp.eye(n, dtype=jnp.float32)
        adj = a / jnp.sum(a, axis=1, keepdims=True)   # row-normalized dense adj
        return x, adj

    def ref_forward(x, adj, p):   # pure-JAX f32 reference (same math as PyTorch)
        z = adj @ jnp.tanh(x @ p["w1"].T)
        z = adj @ jnp.tanh(z @ p["w2"].T)
        return adj @ (z @ p["w3"].T)

    def run_case(key, n, n_input, enc, force_tiled):
        k_in, k_p = jax.random.split(key)
        x, adj = make_inputs(k_in, n, n_input)
        params = init_igae_encoder(k_p, enc[0], enc[1], enc[2], n_input)

        x_p, adj_p, (w1_p, w2_p, w3_p), (n_pad, tm, tk) = prepare_igae_inputs(
            x, adj, params)
        fuse_all = (not force_tiled) and _can_fuse_all(n_pad, x_p.shape[1])

        fwd = jax.jit(functools.partial(
            igae_encoder_forward, n=n, f3=enc[2], tm=tm, tk=tk, fuse_all=fuse_all))
        out = fwd(x_p, adj_p, w1_p, w2_p, w3_p)
        jax.block_until_ready(out)

        ref = ref_forward(x, adj, params)
        assert out.shape == (n, enc[2])
        rel = jnp.linalg.norm(out - ref) / (jnp.linalg.norm(ref) + 1e-12)
        assert float(rel) < 5e-2, f"relative error too high: {float(rel)}"
        return out

    key = jax.random.PRNGKey(0)
    k1, k2 = jax.random.split(key)

    # Case 1: small graph -> single fully-fused kernel, adj resident in VMEM.
    out1 = run_case(k1, n=64, n_input=32, enc=(32, 16, 8), force_tiled=False)
    assert jnp.allclose(
        out1,
        ref_forward(*make_inputs(jax.random.split(k1)[0], 64, 32),
                    init_igae_encoder(jax.random.split(k1)[1], 32, 16, 8, 32)),
        atol=2e-2, rtol=2e-2)

    # Case 2: larger graph -> per-layer fused kernel, 512-wide tiles, 2x2 grid.
    run_case(k2, n=700, n_input=96, enc=(64, 32, 16), force_tiled=True)

    print("KERNEL_OK")
</pallas_src>

<mosaic_0001>
module attributes {stable_mosaic.version = 11 : i64} {
  func.func @_all_fused_kernel(%arg0: i32, %arg1: memref<128x128xf32, #tpu.memory_space<vmem>>, %arg2: memref<128x128xbf16, #tpu.memory_space<vmem>>, %arg3: memref<128x128xbf16, #tpu.memory_space<vmem>>, %arg4: memref<128x128xbf16, #tpu.memory_space<vmem>>, %arg5: memref<128x128xbf16, #tpu.memory_space<vmem>>, %arg6: memref<128x128xf32, #tpu.memory_space<vmem>>) attributes {dimension_semantics = [#tpu.dimension_semantics<arbitrary>], iteration_bounds = array<i64: 1>, scalar_prefetch = 0 : i64, scratch_operands = 0 : i64, tpu.core_type = #tpu.core_type<tc>, window_params = [{pipeline_mode = #tpu.pipeline_mode<synchronous>, transform_indices = @transform_0, window_bounds = array<i64: 128, 128>}, {pipeline_mode = #tpu.pipeline_mode<synchronous>, transform_indices = @transform_1, window_bounds = array<i64: 128, 128>}, {pipeline_mode = #tpu.pipeline_mode<synchronous>, transform_indices = @transform_2, window_bounds = array<i64: 128, 128>}, {pipeline_mode = #tpu.pipeline_mode<synchronous>, transform_indices = @transform_3, window_bounds = array<i64: 128, 128>}, {pipeline_mode = #tpu.pipeline_mode<synchronous>, transform_indices = @transform_4, window_bounds = array<i64: 128, 128>}, {pipeline_mode = #tpu.pipeline_mode<synchronous>, transform_indices = @transform_5, window_bounds = array<i64: 128, 128>}]} {
    %c0 = arith.constant 0 : index
    %c0_0 = arith.constant 0 : index
    %0 = vector.load %arg5[%c0, %c0_0] : memref<128x128xbf16, #tpu.memory_space<vmem>>, vector<128x128xbf16>
    %c0_1 = arith.constant 0 : index
    %c0_2 = arith.constant 0 : index
    %1 = vector.load %arg1[%c0_1, %c0_2] : memref<128x128xf32, #tpu.memory_space<vmem>>, vector<128x128xf32>
    %2 = arith.truncf %1 : vector<128x128xf32> to vector<128x128xbf16>
    %c0_3 = arith.constant 0 : index
    %c0_4 = arith.constant 0 : index
    %3 = vector.load %arg2[%c0_3, %c0_4] : memref<128x128xbf16, #tpu.memory_space<vmem>>, vector<128x128xbf16>
    %cst = arith.constant dense<0.000000e+00> : vector<128x128xf32>
    %4 = tpu.matmul %2, %3, %cst {dimension_numbers = #tpu.dot_dimension_numbers<[1], [1], [0], [0], [0, 0, 1, 0], [], []>} : vector<128x128xbf16>, vector<128x128xbf16>, vector<128x128xf32> -> vector<128x128xf32>
    %5 = math.tanh %4 : vector<128x128xf32>
    %6 = arith.truncf %5 : vector<128x128xf32> to vector<128x128xbf16>
    %cst_5 = arith.constant dense<0.000000e+00> : vector<128x128xf32>
    %7 = tpu.matmul %0, %6, %cst_5 {dimension_numbers = #tpu.dot_dimension_numbers<[1], [0], [0], [1], [0, 0, 1, 1], [], []>} : vector<128x128xbf16>, vector<128x128xbf16>, vector<128x128xf32> -> vector<128x128xf32>
    %8 = arith.truncf %7 : vector<128x128xf32> to vector<128x128xbf16>
    %c0_6 = arith.constant 0 : index
    %c0_7 = arith.constant 0 : index
    %9 = vector.load %arg3[%c0_6, %c0_7] : memref<128x128xbf16, #tpu.memory_space<vmem>>, vector<128x128xbf16>
    %cst_8 = arith.constant dense<0.000000e+00> : vector<128x128xf32>
    %10 = tpu.matmul %8, %9, %cst_8 {dimension_numbers = #tpu.dot_dimension_numbers<[1], [1], [0], [0], [0, 0, 1, 0], [], []>} : vector<128x128xbf16>, vector<128x128xbf16>, vector<128x128xf32> -> vector<128x128xf32>
    %11 = math.tanh %10 : vector<128x128xf32>
    %12 = arith.truncf %11 : vector<128x128xf32> to vector<128x128xbf16>
    %cst_9 = arith.constant dense<0.000000e+00> : vector<128x128xf32>
    %13 = tpu.matmul %0, %12, %cst_9 {dimension_numbers = #tpu.dot_dimension_numbers<[1], [0], [0], [1], [0, 0, 1, 1], [], []>} : vector<128x128xbf16>, vector<128x128xbf16>, vector<128x128xf32> -> vector<128x128xf32>
    %14 = arith.truncf %13 : vector<128x128xf32> to vector<128x128xbf16>
    %c0_10 = arith.constant 0 : index
    %c0_11 = arith.constant 0 : index
    %15 = vector.load %arg4[%c0_10, %c0_11] : memref<128x128xbf16, #tpu.memory_space<vmem>>, vector<128x128xbf16>
    %cst_12 = arith.constant dense<0.000000e+00> : vector<128x128xf32>
    %16 = tpu.matmul %14, %15, %cst_12 {dimension_numbers = #tpu.dot_dimension_numbers<[1], [1], [0], [0], [0, 0, 1, 0], [], []>} : vector<128x128xbf16>, vector<128x128xbf16>, vector<128x128xf32> -> vector<128x128xf32>
    %17 = arith.truncf %16 : vector<128x128xf32> to vector<128x128xbf16>
    %cst_13 = arith.constant dense<0.000000e+00> : vector<128x128xf32>
    %18 = tpu.matmul %0, %17, %cst_13 {dimension_numbers = #tpu.dot_dimension_numbers<[1], [0], [0], [1], [0, 0, 1, 1], [], []>} : vector<128x128xbf16>, vector<128x128xbf16>, vector<128x128xf32> -> vector<128x128xf32>
    %c0_14 = arith.constant 0 : index
    %c0_15 = arith.constant 0 : index
    %19 = vector.load %arg6[%c0_14, %c0_15] : memref<128x128xf32, #tpu.memory_space<vmem>>, vector<128x128xf32>
    tpu.vector_store %arg6[%c0_14, %c0_15], %18 {strides = array<i32>} : memref<128x128xf32, #tpu.memory_space<vmem>>, vector<128x128xf32>,
    return
  }
  func.func @transform_0(%arg0: i32) -> (i32, i32) {
    %c0_i32 = arith.constant 0 : i32
    %c0_i32_0 = arith.constant 0 : i32
    %c0_i32_1 = arith.constant 0 : i32
    return %c0_i32, %c0_i32_0 : i32, i32
  }
  func.func @transform_1(%arg0: i32) -> (i32, i32) {
    %c0_i32 = arith.constant 0 : i32
    %c0_i32_0 = arith.constant 0 : i32
    %c0_i32_1 = arith.constant 0 : i32
    return %c0_i32, %c0_i32_0 : i32, i32
  }
  func.func @transform_2(%arg0: i32) -> (i32, i32) {
    %c0_i32 = arith.constant 0 : i32
    %c0_i32_0 = arith.constant 0 : i32
    %c0_i32_1 = arith.constant 0 : i32
    return %c0_i32, %c0_i32_0 : i32, i32
  }
  func.func @transform_3(%arg0: i32) -> (i32, i32) {
    %c0_i32 = arith.constant 0 : i32
    %c0_i32_0 = arith.constant 0 : i32
    %c0_i32_1 = arith.constant 0 : i32
    return %c0_i32, %c0_i32_0 : i32, i32
  }
  func.func @transform_4(%arg0: i32) -> (i32, i32) {
    %c0_i32 = arith.constant 0 : i32
    %c0_i32_0 = arith.constant 0 : i32
    %c0_i32_1 = arith.constant 0 : i32
    return %c0_i32, %c0_i32_0 : i32, i32
  }
  func.func @transform_5(%arg0: i32) -> (i32, i32) {
    %c0_i32 = arith.constant 0 : i32
    %c0_i32_0 = arith.constant 0 : i32
    %c0_i32_1 = arith.constant 0 : i32
    return %c0_i32, %c0_i32_0 : i32, i32
  }
}

</mosaic_0001>

<bundles_post_ra>
// kernel: igae_encoder_forward.1
= control target key start
LH: loop header
LB: loop body
LE: loop exit
PB: predicated region body
PF: predicated region fallthrough
CT: control target
= control target key end

     0   :  { %10 = vsyncpa [#allocation3], 0  ;;  %s1786_s0 = inlined_call_operand.hbm [shape: f32[128,128], index: 0, kind: input, shape index: {}]   ;;  %s1787_s1 = inlined_call_operand.hbm [shape: bf16[128,128], index: 1, kind: input, shape index: {}]   ;;  %s1788_s2 = inlined_call_operand.hbm [shape: bf16[128,128], index: 2, kind: input, shape index: {}]   ;;  %s1789_s3 = inlined_call_operand.hbm [shape: bf16[128,128], index: 3, kind: input, shape index: {}]   ;;  %s1790_s4 = inlined_call_operand.hbm [shape: bf16[128,128], index: 4, kind: input, shape index: {}]   ;;  %s1791_s5 = inlined_call_operand.vmem [shape: f32[128,128], index: 5, kind: output, shape index: {}]  }
   0x1   :  { %11 = vsyncpa [#allocation5], 0 }
   0x2   :  { %12 = vsyncpa [#allocation8], 0  ;;  %s1587_s18 = smov [#allocation4]   ;;  %s1471_s22 = scalar_lea.hbm %s1787_s1, 1024 }
   0x3   :  { %s30_s19 = sshll.u32 %s1587_s18, 4  ;;  %p1472_p0 = scmp.ne.s32.totalorder %s1787_s1, %s1471_s22  ;;  %s31_s19 = int_to_ptr.vmem [resolvable:$true] %s30_s19 }
   0x4   :  { %p1475_p1 = scmp.lt.u32.totalorder %s1471_s22, %s1787_s1 }
   0x6   :  { %p1477_p2 = pnand %p1475_p1, %p1472_p0 }
   0x8   :  { %1480 = shalt.err (!%p1477_p2)
}
   0x9   :  { %s1481_s27 = scalar_lea.vmem %s31_s19, 1024  ;;  %p1486_p4 = scmp.lt.s32.totalorder %s31_s19, %s31_s19 }
   0xa   :  { %p1482_p3 = scmp.ne.s32.totalorder %s31_s19, %s1481_s27  ;;  %p1487_p5 = scmp.lt.s32.totalorder %s1481_s27, %s1481_s27 }
   0xc   :  { %p1488_p6 = por %p1487_p5, %p1486_p4 }
   0xe   :  { %p1489_p7 = pnand %p1488_p6, %p1482_p3 }
  0x10   :  { %1492 = shalt.err (!%p1489_p7)
}
  0x11   :  { %s1588_s28 = smov 64   ;;  %s1589_s29 = smov 4  }
  0x12   :  { %36 = dma.hbm_to_vmem [thread:$0]  %s1787_s1, 1024, %s31_s19, [#allocation5], %s1588_s28, %s1588_s28, %s1589_s29  }
  0x13   :  { %s1590_s7 = smov [#allocation7]   ;;  %s1591_s9 = smov [#allocation2]  }
  0x14   :  { %s54_s8 = sshll.u32 %s1590_s7, 4  ;;  %s18_s10 = sshll.u32 %s1591_s9, 4  ;;  %s55_s8 = int_to_ptr.vmem [resolvable:$true] %s54_s8  ;;  %s19_s10 = int_to_ptr.vmem [resolvable:$true] %s18_s10 }
  0x15   :  { %s1493_s13 = scalar_lea.hbm %s1789_s3, 1024 }
  0x16   :  { %p1494_p8 = scmp.ne.s32.totalorder %s1789_s3, %s1493_s13  ;;  %p1497_p9 = scmp.lt.u32.totalorder %s1493_s13, %s1789_s3 }
  0x18   :  { %p1499_p10 = pnand %p1497_p9, %p1494_p8 }
  0x1a   :  { %1502 = shalt.err (!%p1499_p10)
}
  0x1b   :  { %s1503_s1 = scalar_lea.vmem %s55_s8, 1024  ;;  %p1508_p12 = scmp.lt.s32.totalorder %s55_s8, %s55_s8 }
  0x1c   :  { %p1504_p11 = scmp.ne.s32.totalorder %s55_s8, %s1503_s1  ;;  %p1509_p13 = scmp.lt.s32.totalorder %s1503_s1, %s1503_s1 }
  0x1e   :  { %p1510_p0 = por %p1509_p13, %p1508_p12 }
  0x20   :  { %p1511_p1 = pnand %p1510_p0, %p1504_p11 }
  0x22   :  { %1514 = shalt.err (!%p1511_p1)
}
  0x23   :  { %60 = dma.hbm_to_vmem [thread:$0]  %s1789_s3, 1024, %s55_s8, [#allocation8], %s1588_s28, %s1588_s28, %s1589_s29  }
  0x24   :  { %s1515_s22 = scalar_lea.hbm %s1786_s0, 2048 }
  0x25   :  { %p1516_p2 = scmp.ne.s32.totalorder %s1786_s0, %s1515_s22  ;;  %p1519_p3 = scmp.lt.u32.totalorder %s1515_s22, %s1786_s0 }
  0x27   :  { %p1521_p4 = pnand %p1519_p3, %p1516_p2 }
  0x29   :  { %1524 = shalt.err (!%p1521_p4)
}
  0x2a   :  { %s1525_s27 = scalar_lea.vmem %s19_s10, 2048  ;;  %p1530_p6 = scmp.lt.s32.totalorder %s19_s10, %s19_s10 }
  0x2b   :  { %p1526_p5 = scmp.ne.s32.totalorder %s19_s10, %s1525_s27  ;;  %p1531_p7 = scmp.lt.s32.totalorder %s1525_s27, %s1525_s27 }
  0x2d   :  { %p1532_p8 = por %p1531_p7, %p1530_p6 }
  0x2f   :  { %p1533_p9 = pnand %p1532_p8, %p1526_p5 }
  0x31   :  { %1536 = shalt.err (!%p1533_p9)
}
  0x32   :  { %s1592_s3 = smov 128   ;;  %s1593_s30 = smov 8  }
  0x33   :  { %24 = dma.hbm_to_vmem [thread:$0]  %s1786_s0, 2048, %s19_s10, [#allocation3], %s1592_s3, %s1592_s3, %s1593_s30  }
  0x34   :  { %s1594_s8 = smov [#allocation6]   ;;  %s1595_s11 = smov [#allocation9]  }
  0x35   :  { %s42_s9 = sshll.u32 %s1594_s8, 4  ;;  %s66_s12 = sshll.u32 %s1595_s11, 4  ;;  %s43_s9 = int_to_ptr.vmem [resolvable:$true] %s42_s9  ;;  %s67_s12 = int_to_ptr.vmem [resolvable:$true] %s66_s12 }
  0x36   :  { %s1537_s15 = scalar_lea.hbm %s1788_s2, 1024 }
  0x37   :  { %p1538_p10 = scmp.ne.s32.totalorder %s1788_s2, %s1537_s15  ;;  %p1541_p11 = scmp.lt.u32.totalorder %s1537_s15, %s1788_s2 }
  0x39   :  { %p1543_p12 = pnand %p1541_p11, %p1538_p10 }
  0x3b   :  { %1546 = shalt.err (!%p1543_p12)
}
  0x3c   :  { %s1547_s0 = scalar_lea.vmem %s43_s9, 1024  ;;  %p1552_p0 = scmp.lt.s32.totalorder %s43_s9, %s43_s9 }
  0x3d   :  { %p1548_p13 = scmp.ne.s32.totalorder %s43_s9, %s1547_s0  ;;  %p1553_p1 = scmp.lt.s32.totalorder %s1547_s0, %s1547_s0 }
  0x3f   :  { %p1554_p2 = por %p1553_p1, %p1552_p0 }
  0x41   :  { %p1555_p3 = pnand %p1554_p2, %p1548_p13 }
  0x43   :  { %1558 = shalt.err (!%p1555_p3)
}
  0x44   :  { %48 = dma.hbm_to_vmem [thread:$0]  %s1788_s2, 1024, %s43_s9, [#allocation5], %s1588_s28, %s1588_s28, %s1589_s29  }
  0x45   :  { %s1559_s22 = scalar_lea.hbm %s1790_s4, 1024 }
  0x46   :  { %p1560_p4 = scmp.ne.s32.totalorder %s1790_s4, %s1559_s22  ;;  %p1563_p5 = scmp.lt.u32.totalorder %s1559_s22, %s1790_s4 }
  0x48   :  { %p1565_p6 = pnand %p1563_p5, %p1560_p4 }
  0x4a   :  { %1568 = shalt.err (!%p1565_p6)
}
  0x4b   :  { %s1569_s27 = scalar_lea.vmem %s67_s12, 1024  ;;  %p1574_p8 = scmp.lt.s32.totalorder %s67_s12, %s67_s12 }
  0x4c   :  { %p1570_p7 = scmp.ne.s32.totalorder %s67_s12, %s1569_s27  ;;  %p1575_p9 = scmp.lt.s32.totalorder %s1569_s27, %s1569_s27 }
  0x4e   :  { %p1576_p10 = por %p1575_p9, %p1574_p8 }
  0x50   :  { %p1577_p11 = pnand %p1576_p10, %p1570_p7 }
  0x52   :  { %1580 = shalt.err (!%p1577_p11)
}
  0x53   :  { %72 = dma.hbm_to_vmem [thread:$0]  %s1790_s4, 1024, %s67_s12, [#allocation8], %s1588_s28, %s1588_s28, %s1589_s29  }
  0x54   :  { %1581 = dma.done.wait [#allocation3], 2048  }
  0x55   :  { %1582 = vsyncadd [#allocation3], 4294965248 }
  0x56   :  { %1583 = dma.done.wait [#allocation5], 2048  }
  0x57   :  { %1584 = vsyncadd [#allocation5], 4294965248 }
  0x58   :  { %1585 = dma.done.wait [#allocation8], 2048  }
  0x59   :  { %1586 = vsyncadd [#allocation8], 4294965248  ;;  %v1375_v0 = vld [vmem:[#allocation4] sm:$0xff]   ;;  %v1376_v1 = vld [vmem:[#allocation4 + $0x8] sm:$0xff]  }
  0x5a   :  { %1174 = vmatprep.subr.bf16.mxu0 %v1375_v0  ;;  %v1377_v2 = vld [vmem:[#allocation4 + $0x10] sm:$0xff]   ;;  %v105_v3 = vld [vmem:[#allocation2] sm:$0xff]  ;;  %v106_v4 = vld [vmem:[#allocation2 + $0x8] sm:$0xff] }
  0x5b   :  { %1175 = vmatpush3.bf16.xpose.msra.mxu0 %v1375_v0  ;;  %v121_v5 = vpack.c.bf16 %v106_v4, %v105_v3  ;;  %v1378_v6 = vld [vmem:[#allocation4 + $0x18] sm:$0xff]   ;;  %v1379_v7 = vld [vmem:[#allocation4 + $0x20] sm:$0xff]   ;;  %v1380_v8 = vld [vmem:[#allocation4 + $0x28] sm:$0xff]  }
  0x5c   :  { %1176 = vmatprep.subr.bf16.mxu0 %v1376_v1  ;;  %v1381_v9 = vld [vmem:[#allocation4 + $0x30] sm:$0xff]   ;;  %v1382_v10 = vld [vmem:[#allocation4 + $0x38] sm:$0xff]   ;;  %v109_v13 = vld [vmem:[#allocation2 + $0x20] sm:$0xff] }
  0x5d   :  { %1190 = vmatprep.mubr.bf16.mxu0 %v121_v5  ;;  %v107_v11 = vld [vmem:[#allocation2 + $0x10] sm:$0xff]  ;;  %v108_v12 = vld [vmem:[#allocation2 + $0x18] sm:$0xff]  ;;  %v110_v14 = vld [vmem:[#allocation2 + $0x28] sm:$0xff] }
  0x5e   :  { %v122_v15 = vpack.c.bf16 %v108_v12, %v107_v11  ;;  %v123_v16 = vpack.c.bf16 %v110_v14, %v109_v13  ;;  %v111_v17 = vld [vmem:[#allocation2 + $0x30] sm:$0xff]  ;;  %v112_v18 = vld [vmem:[#allocation2 + $0x38] sm:$0xff]  ;;  %v113_v19 = vld [vmem:[#allocation2 + $0x40] sm:$0xff] }
  0x5f   :  { %v114_v20 = vld [vmem:[#allocation2 + $0x48] sm:$0xff]  ;;  %v124_v21 = vpack.c.bf16 %v112_v18, %v111_v17  ;;  %v115_v23 = vld [vmem:[#allocation2 + $0x50] sm:$0xff]  ;;  %v116_v24 = vld [vmem:[#allocation2 + $0x58] sm:$0xff] }
  0x60   :  { %v125_v22 = vpack.c.bf16 %v114_v20, %v113_v19  ;;  %v117_v25 = vld [vmem:[#allocation2 + $0x60] sm:$0xff]  ;;  %v118_v26 = vld [vmem:[#allocation2 + $0x68] sm:$0xff]  ;;  %v126_v27 = vpack.c.bf16 %v116_v24, %v115_v23  ;;  %v119_v29 = vld [vmem:[#allocation2 + $0x70] sm:$0xff] }
  0x61   :  { %v127_v28 = vpack.c.bf16 %v118_v26, %v117_v25  ;;  %v120_v30 = vld [vmem:[#allocation2 + $0x78] sm:$0xff]  ;;  %v1698_v32 = vld [vmem:[#allocation9] sm:$0xff]   ;;  %v1704_v11 = vld [vmem:[#allocation9 + $0x10] sm:$0xff]  }
  0x62   :  { %v128_v31 = vpack.c.bf16 %v120_v30, %v119_v29  ;;  %1222 = vmatprep.mubr.bf16.mxu1 %v1698_v32  ;;  %v1392_v12 = vld [vmem:[#allocation6 + $0x8] sm:$0xff]   ;;  %v1708_v13 = vld [vmem:[#allocation9 + $0x18] sm:$0xff]   ;;  %v1710_v14 = vld [vmem:[#allocation9 + $0x20] sm:$0xff]  }
  0x63   :  { %1177 = vmatpush3.bf16.xpose.msra.mxu0 %v1376_v1  ;;  %v1716_v17 = vld [vmem:[#allocation9 + $0x30] sm:$0xff]   ;;  %v1394_v18 = vld [vmem:[#allocation6 + $0x18] sm:$0xff]   ;;  %v1395_v20 = vld [vmem:[#allocation6 + $0x20] sm:$0xff]  }
  0x64   :  { %1178 = vmatprep.subr.bf16.mxu0 %v1377_v2  ;;  %v1720_v19 = vld [vmem:[#allocation9 + $0x38] sm:$0xff]  }
  0x65   :  { %v1398_v23 = vld [vmem:[#allocation6 + $0x38] sm:$0xff]  }
  0x6b   :  { %1179 = vmatpush3.bf16.xpose.msra.mxu0 %v1377_v2 }
  0x6c   :  { %1180 = vmatprep.subr.bf16.mxu0 %v1378_v6 }
  0x73   :  { %1181 = vmatpush3.bf16.xpose.msra.mxu0 %v1378_v6 }
  0x74   :  { %1182 = vmatprep.subr.bf16.mxu0 %v1379_v7 }
  0x7b   :  { %1183 = vmatpush3.bf16.xpose.msra.mxu0 %v1379_v7 }
  0x7c   :  { %1184 = vmatprep.subr.bf16.mxu0 %v1380_v8 }
  0x83   :  { %1185 = vmatpush3.bf16.xpose.msra.mxu0 %v1380_v8 }
  0x84   :  { %1186 = vmatprep.subr.bf16.mxu0 %v1381_v9 }
  0x8b   :  { %1187 = vmatpush3.bf16.xpose.msra.mxu0 %v1381_v9  ;;  %v1391_v9 = vld [vmem:[#allocation6] sm:$0xff]  }
  0x8c   :  { %1188 = vmatprep.subr.bf16.mxu0 %v1382_v10 }
  0x93   :  { %1189 = vmatpush3.bf16.xpose.msra.mxu0 %v1382_v10  ;;  %v1702_v10 = vld [vmem:[#allocation9 + $0x8] sm:$0xff]  }
  0x9a   :  { %1191 = vmatmul.mubr.bf16.vlgmr.msra.gmra.mrb[0].mxu0 %v122_v15  ;;  %v1393_v15 = vld [vmem:[#allocation6 + $0x10] sm:$0xff]  }
  0x9b   :  { %1194 = vmatprep.mubr.bf16.mxu0 %v123_v16  ;;  %v1714_v16 = vld [vmem:[#allocation9 + $0x28] sm:$0xff]  }
  0xa2   :  { %1195 = vmatmul.mubr.bf16.gmra.mrb[4].mxu0 %v124_v21  ;;  %v1396_v21 = vld [vmem:[#allocation6 + $0x28] sm:$0xff]  }
  0xa3   :  { %1198 = vmatprep.mubr.bf16.mxu0 %v125_v22  ;;  %v1397_v22 = vld [vmem:[#allocation6 + $0x30] sm:$0xff]  }
  0xaa   :  { %1199 = vmatmul.mubr.bf16.gmra.mrb[8].mxu0 %v126_v27 }
  0xab   :  { %1202 = vmatprep.mubr.bf16.mxu0 %v127_v28 }
  0xb2   :  { %1203 = vmatmul.mubr.bf16.gmra.mrb[12].mxu0 %v128_v31 }
  0xb3   :  { %1286 = vmatprep.mubr.bf16.mxu0 %v1698_v32 }
 0x16d   :  { %v1192_v33 = vpop.f32.mrb[0].mxu0 }
 0x16e   :  { %1407 = vtanh.f32 %v1192_v33  ;;  %v227_v34 = vpop.f32.mrb[1].mxu0 }
 0x16f   :  { %1409 = vtanh.f32 %v227_v34  ;;  %v1193_v35 = vpop.f32.mrb[2].mxu0 }
 0x170   :  { %1411 = vtanh.f32 %v1193_v35  ;;  %v230_v36 = vpop.f32.mrb[3].mxu0 }
 0x171   :  { %1413 = vtanh.f32 %v230_v36 }
 0x175   :  { %v1196_v37 = vpop.f32.mrb[4].mxu0 }
 0x176   :  { %1415 = vtanh.f32 %v1196_v37  ;;  %v243_v38 = vpop.f32.mrb[5].mxu0 }
 0x177   :  { %1417 = vtanh.f32 %v243_v38  ;;  %v1197_v39 = vpop.f32.mrb[6].mxu0 }
 0x178   :  { %v1408_v40 = vpop.eup %1407  ;;  %1419 = vtanh.f32 %v1197_v39  ;;  %v246_v41 = vpop.f32.mrb[7].mxu0 }
 0x179   :  { %v1410_v42 = vpop.eup %1409  ;;  %1421 = vtanh.f32 %v246_v41 }
 0x17a   :  { %v1412_v43 = vpop.eup %1411 }
 0x17b   :  { %v1414_v44 = vpop.eup %1413  ;;  %v307_v45 = vpack.c.bf16 %v1412_v43, %v1408_v40 }
 0x17c   :  { %v306_v46 = vpack.c.bf16 %v1414_v44, %v1410_v42 }
 0x17d   :  { %v1200_v47 = vpop.f32.mrb[8].mxu0 }
 0x17e   :  { %1423 = vtanh.f32 %v1200_v47  ;;  %v259_v48 = vpop.f32.mrb[9].mxu0  ;;  %1206 = vmatprep.subr.bf16.mxu1 %v306_v46 }
 0x17f   :  { %1425 = vtanh.f32 %v259_v48  ;;  %v1201_v49 = vpop.f32.mrb[10].mxu0  ;;  %1207 = vmatpush3.bf16.msra.mxu1 %v306_v46 }
 0x180   :  { %v1416_v50 = vpop.eup %1415  ;;  %1427 = vtanh.f32 %v1201_v49  ;;  %v262_v51 = vpop.f32.mrb[11].mxu0  ;;  %1208 = vmatprep.subr.bf16.mxu1 %v307_v45 }
 0x181   :  { %v1418_v52 = vpop.eup %1417  ;;  %1429 = vtanh.f32 %v262_v51 }
 0x182   :  { %v1420_v53 = vpop.eup %1419 }
 0x183   :  { %v1422_v54 = vpop.eup %1421  ;;  %1209 = vmatpush3.bf16.msra.mxu1 %v307_v45  ;;  %v309_v55 = vpack.c.bf16 %v1420_v53, %v1416_v50 }
 0x184   :  { %v308_v56 = vpack.c.bf16 %v1422_v54, %v1418_v52 }
 0x185   :  { %v1204_v57 = vpop.f32.mrb[12].mxu0 }
 0x186   :  { %1431 = vtanh.f32 %v1204_v57  ;;  %v275_v58 = vpop.f32.mrb[13].mxu0  ;;  %1210 = vmatprep.subr.bf16.mxu1 %v308_v56 }
 0x187   :  { %1433 = vtanh.f32 %v275_v58  ;;  %v1205_v59 = vpop.f32.mrb[14].mxu0  ;;  %1211 = vmatpush3.bf16.msra.mxu1 %v308_v56 }
 0x188   :  { %v1424_v60 = vpop.eup %1423  ;;  %1435 = vtanh.f32 %v1205_v59  ;;  %v278_v61 = vpop.f32.mrb[15].mxu0  ;;  %1212 = vmatprep.subr.bf16.mxu1 %v309_v55 }
 0x189   :  { %v1426_v62 = vpop.eup %1425  ;;  %1437 = vtanh.f32 %v278_v61 }
 0x18a   :  { %v1428_v63 = vpop.eup %1427 }
 0x18b   :  { %v1430_v0 = vpop.eup %1429  ;;  %1213 = vmatpush3.bf16.msra.mxu1 %v309_v55  ;;  %v311_v1 = vpack.c.bf16 %v1428_v63, %v1424_v60 }
 0x18c   :  { %v310_v2 = vpack.c.bf16 %v1430_v0, %v1426_v62 }
 0x18e   :  { %1214 = vmatprep.subr.bf16.mxu1 %v310_v2 }
 0x18f   :  { %1215 = vmatpush3.bf16.msra.mxu1 %v310_v2 }
 0x190   :  { %v1432_v3 = vpop.eup %1431  ;;  %1216 = vmatprep.subr.bf16.mxu1 %v311_v1 }
 0x191   :  { %v1434_v4 = vpop.eup %1433 }
 0x192   :  { %v1436_v5 = vpop.eup %1435 }
 0x193   :  { %v1438_v6 = vpop.eup %1437  ;;  %1217 = vmatpush3.bf16.msra.mxu1 %v311_v1  ;;  %v313_v7 = vpack.c.bf16 %v1436_v5, %v1432_v3 }
 0x194   :  { %v312_v8 = vpack.c.bf16 %v1438_v6, %v1434_v4 }
 0x196   :  { %1218 = vmatprep.subr.bf16.mxu1 %v312_v8 }
 0x197   :  { %1219 = vmatpush3.bf16.msra.mxu1 %v312_v8 }
 0x198   :  { %1220 = vmatprep.subr.bf16.mxu1 %v313_v7 }
 0x19b   :  { %1221 = vmatpush3.bf16.msra.mxu1 %v313_v7 }
 0x19c   :  { %1238 = vmatprep.subr.bf16.mxu1 %v1391_v9 }
 0x19e   :  { %1223 = vmatmul.mubr.bf16.vlgmr.msra.gmra.mrb[0].mxu1 %v1702_v10 }
 0x19f   :  { %1226 = vmatprep.mubr.bf16.mxu1 %v1704_v11 }
 0x1a4   :  { %1239 = vmatpush3.bf16.xpose.msra.mxu1 %v1391_v9 }
 0x1a5   :  { %1240 = vmatprep.subr.bf16.mxu1 %v1392_v12 }
 0x1a6   :  { %1227 = vmatmul.mubr.bf16.gmra.mrb[4].mxu1 %v1708_v13 }
 0x1a7   :  { %1230 = vmatprep.mubr.bf16.mxu1 %v1710_v14 }
 0x1ac   :  { %1241 = vmatpush3.bf16.xpose.msra.mxu1 %v1392_v12 }
 0x1ad   :  { %1242 = vmatprep.subr.bf16.mxu1 %v1393_v15 }
 0x1ae   :  { %1231 = vmatmul.mubr.bf16.gmra.mrb[8].mxu1 %v1714_v16 }
 0x1af   :  { %1234 = vmatprep.mubr.bf16.mxu1 %v1716_v17 }
 0x1b4   :  { %1243 = vmatpush3.bf16.xpose.msra.mxu1 %v1393_v15 }
 0x1b5   :  { %1244 = vmatprep.subr.bf16.mxu1 %v1394_v18 }
 0x1b6   :  { %1235 = vmatmul.mubr.bf16.gmra.mrb[12].mxu1 %v1720_v19 }
 0x1bc   :  { %1245 = vmatpush3.bf16.xpose.msra.mxu1 %v1394_v18 }
 0x1bd   :  { %1246 = vmatprep.subr.bf16.mxu1 %v1395_v20 }
 0x1c4   :  { %1247 = vmatpush3.bf16.xpose.msra.mxu1 %v1395_v20 }
 0x1c5   :  { %1248 = vmatprep.subr.bf16.mxu1 %v1396_v21 }
 0x1cc   :  { %1249 = vmatpush3.bf16.xpose.msra.mxu1 %v1396_v21 }
 0x1cd   :  { %1250 = vmatprep.subr.bf16.mxu1 %v1397_v22 }
 0x1d4   :  { %1251 = vmatpush3.bf16.xpose.msra.mxu1 %v1397_v22 }
 0x1d5   :  { %1252 = vmatprep.subr.bf16.mxu1 %v1398_v23 }
 0x1dc   :  { %1253 = vmatpush3.bf16.xpose.msra.mxu1 %v1398_v23 }
 0x271   :  { %v1224_v24 = vpop.f32.mrb[0].mxu1 }
 0x272   :  { %v396_v25 = vpop.f32.mrb[1].mxu1 }
 0x273   :  { %v1225_v26 = vpop.f32.mrb[2].mxu1 }
 0x274   :  { %v460_v27 = vpack.c.bf16 %v1225_v26, %v1224_v24  ;;  %v399_v28 = vpop.f32.mrb[3].mxu1 }
 0x275   :  { %v459_v29 = vpack.c.bf16 %v399_v28, %v396_v25 }
 0x277   :  { %1254 = vmatprep.mubr.bf16.mxu1 %v459_v29 }
 0x278   :  { %1255 = vmatmul.mubr.bf16.vlgmr.msra.gmra.mrb[16].mxu1 %v460_v27 }
 0x279   :  { %v1228_v30 = vpop.f32.mrb[4].mxu1 }
 0x27a   :  { %v412_v31 = vpop.f32.mrb[5].mxu1 }
 0x27b   :  { %v1229_v33 = vpop.f32.mrb[6].mxu1 }
 0x27c   :  { %v462_v34 = vpack.c.bf16 %v1229_v33, %v1228_v30  ;;  %v415_v35 = vpop.f32.mrb[7].mxu1  ;;  %v1400_v33 = vld [vmem:[#allocation7 + $0x8] sm:$0xff]  }
 0x27d   :  { %v461_v36 = vpack.c.bf16 %v415_v35, %v412_v31  ;;  %v1399_v31 = vld [vmem:[#allocation7] sm:$0xff]   ;;  %v1402_v35 = vld [vmem:[#allocation7 + $0x18] sm:$0xff]  }
 0x27f   :  { %1258 = vmatprep.mubr.bf16.mxu1 %v461_v36  ;;  %v1403_v36 = vld [vmem:[#allocation7 + $0x20] sm:$0xff]  }
 0x280   :  { %1259 = vmatmul.mubr.bf16.gmra.mrb[20].mxu1 %v462_v34  ;;  %v1401_v34 = vld [vmem:[#allocation7 + $0x10] sm:$0xff]  }
 0x281   :  { %v1232_v37 = vpop.f32.mrb[8].mxu1 }
 0x282   :  { %v428_v38 = vpop.f32.mrb[9].mxu1 }
 0x283   :  { %v1233_v39 = vpop.f32.mrb[10].mxu1 }
 0x284   :  { %v464_v40 = vpack.c.bf16 %v1233_v39, %v1232_v37  ;;  %v431_v41 = vpop.f32.mrb[11].mxu1  ;;  %v1404_v37 = vld [vmem:[#allocation7 + $0x28] sm:$0xff]   ;;  %v1406_v39 = vld [vmem:[#allocation7 + $0x38] sm:$0xff]  }
 0x285   :  { %v463_v42 = vpack.c.bf16 %v431_v41, %v428_v38  ;;  %v1405_v38 = vld [vmem:[#allocation7 + $0x30] sm:$0xff]  }
 0x287   :  { %1262 = vmatprep.mubr.bf16.mxu1 %v463_v42 }
 0x288   :  { %1263 = vmatmul.mubr.bf16.gmra.mrb[24].mxu1 %v464_v40 }
 0x289   :  { %v1236_v43 = vpop.f32.mrb[12].mxu1 }
 0x28a   :  { %v444_v44 = vpop.f32.mrb[13].mxu1 }
 0x28b   :  { %v1237_v45 = vpop.f32.mrb[14].mxu1 }
 0x28c   :  { %v466_v46 = vpack.c.bf16 %v1237_v45, %v1236_v43  ;;  %v447_v47 = vpop.f32.mrb[15].mxu1 }
 0x28d   :  { %v465_v48 = vpack.c.bf16 %v447_v47, %v444_v44 }
 0x28f   :  { %1266 = vmatprep.mubr.bf16.mxu1 %v465_v48 }
 0x290   :  { %1267 = vmatmul.mubr.bf16.gmra.mrb[28].mxu1 %v466_v46 }
 0x291   :  { %1350 = vmatprep.mubr.bf16.mxu1 %v1698_v32 }
 0x34b   :  { %v1256_v49 = vpop.f32.mrb[16].mxu1 }
 0x34c   :  { %1439 = vtanh.f32 %v1256_v49  ;;  %v565_v50 = vpop.f32.mrb[17].mxu1 }
 0x34d   :  { %1441 = vtanh.f32 %v565_v50  ;;  %v1257_v51 = vpop.f32.mrb[18].mxu1 }
 0x34e   :  { %1443 = vtanh.f32 %v1257_v51  ;;  %v568_v52 = vpop.f32.mrb[19].mxu1 }
 0x34f   :  { %1445 = vtanh.f32 %v568_v52 }
 0x353   :  { %v1260_v53 = vpop.f32.mrb[20].mxu1 }
 0x354   :  { %1447 = vtanh.f32 %v1260_v53  ;;  %v581_v54 = vpop.f32.mrb[21].mxu1 }
 0x355   :  { %1449 = vtanh.f32 %v581_v54  ;;  %v1261_v55 = vpop.f32.mrb[22].mxu1 }
 0x356   :  { %v1440_v56 = vpop.eup %1439  ;;  %1451 = vtanh.f32 %v1261_v55  ;;  %v584_v57 = vpop.f32.mrb[23].mxu1 }
 0x357   :  { %v1442_v58 = vpop.eup %1441  ;;  %1453 = vtanh.f32 %v584_v57 }
 0x358   :  { %v1444_v59 = vpop.eup %1443 }
 0x359   :  { %v1446_v32 = vpop.eup %1445  ;;  %v645_v60 = vpack.c.bf16 %v1444_v59, %v1440_v56 }
 0x35a   :  { %v644_v61 = vpack.c.bf16 %v1446_v32, %v1442_v58 }
 0x35b   :  { %v1264_v62 = vpop.f32.mrb[24].mxu1 }
 0x35c   :  { %1455 = vtanh.f32 %v1264_v62  ;;  %v597_v63 = vpop.f32.mrb[25].mxu1  ;;  %1270 = vmatprep.subr.bf16.mxu0 %v644_v61 }
 0x35d   :  { %1457 = vtanh.f32 %v597_v63  ;;  %v1265_v0 = vpop.f32.mrb[26].mxu1  ;;  %1271 = vmatpush3.bf16.msra.mxu0 %v644_v61 }
 0x35e   :  { %v1448_v1 = vpop.eup %1447  ;;  %1459 = vtanh.f32 %v1265_v0  ;;  %v600_v2 = vpop.f32.mrb[27].mxu1  ;;  %1272 = vmatprep.subr.bf16.mxu0 %v645_v60 }
 0x35f   :  { %v1450_v3 = vpop.eup %1449  ;;  %1461 = vtanh.f32 %v600_v2 }
 0x360   :  { %v1452_v4 = vpop.eup %1451 }
 0x361   :  { %v1454_v5 = vpop.eup %1453  ;;  %1273 = vmatpush3.bf16.msra.mxu0 %v645_v60  ;;  %v647_v6 = vpack.c.bf16 %v1452_v4, %v1448_v1 }
 0x362   :  { %v646_v7 = vpack.c.bf16 %v1454_v5, %v1450_v3 }
 0x363   :  { %v1268_v8 = vpop.f32.mrb[28].mxu1 }
 0x364   :  { %1463 = vtanh.f32 %v1268_v8  ;;  %v613_v9 = vpop.f32.mrb[29].mxu1  ;;  %1274 = vmatprep.subr.bf16.mxu0 %v646_v7 }
 0x365   :  { %1465 = vtanh.f32 %v613_v9  ;;  %v1269_v12 = vpop.f32.mrb[30].mxu1  ;;  %1275 = vmatpush3.bf16.msra.mxu0 %v646_v7 }
 0x366   :  { %v1456_v15 = vpop.eup %1455  ;;  %1467 = vtanh.f32 %v1269_v12  ;;  %v616_v18 = vpop.f32.mrb[31].mxu1  ;;  %1276 = vmatprep.subr.bf16.mxu0 %v647_v6 }
 0x367   :  { %v1458_v20 = vpop.eup %1457  ;;  %1469 = vtanh.f32 %v616_v18 }
 0x368   :  { %v1460_v21 = vpop.eup %1459 }
 0x369   :  { %v1462_v22 = vpop.eup %1461  ;;  %1277 = vmatpush3.bf16.msra.mxu0 %v647_v6  ;;  %v649_v23 = vpack.c.bf16 %v1460_v21, %v1456_v15 }
 0x36a   :  { %v648_v24 = vpack.c.bf16 %v1462_v22, %v1458_v20 }
 0x36c   :  { %1278 = vmatprep.subr.bf16.mxu0 %v648_v24 }
 0x36d   :  { %1279 = vmatpush3.bf16.msra.mxu0 %v648_v24 }
 0x36e   :  { %v1464_v25 = vpop.eup %1463  ;;  %1280 = vmatprep.subr.bf16.mxu0 %v649_v23 }
 0x36f   :  { %v1466_v26 = vpop.eup %1465 }
 0x370   :  { %v1468_v27 = vpop.eup %1467 }
 0x371   :  { %v1470_v28 = vpop.eup %1469  ;;  %1281 = vmatpush3.bf16.msra.mxu0 %v649_v23  ;;  %v651_v29 = vpack.c.bf16 %v1468_v27, %v1464_v25 }
 0x372   :  { %v650_v30 = vpack.c.bf16 %v1470_v28, %v1466_v26 }
 0x374   :  { %1282 = vmatprep.subr.bf16.mxu0 %v650_v30 }
 0x375   :  { %1283 = vmatpush3.bf16.msra.mxu0 %v650_v30 }
 0x376   :  { %1284 = vmatprep.subr.bf16.mxu0 %v651_v29 }
 0x379   :  { %1285 = vmatpush3.bf16.msra.mxu0 %v651_v29 }
 0x37a   :  { %1302 = vmatprep.subr.bf16.mxu0 %v1399_v31 }
 0x37c   :  { %1287 = vmatmul.mubr.bf16.vlgmr.msra.gmra.mrb[16].mxu0 %v1702_v10 }
 0x37d   :  { %1290 = vmatprep.mubr.bf16.mxu0 %v1704_v11 }
 0x382   :  { %1303 = vmatpush3.bf16.xpose.msra.mxu0 %v1399_v31 }
 0x383   :  { %1304 = vmatprep.subr.bf16.mxu0 %v1400_v33 }
 0x384   :  { %1291 = vmatmul.mubr.bf16.gmra.mrb[20].mxu0 %v1708_v13 }
 0x385   :  { %1294 = vmatprep.mubr.bf16.mxu0 %v1710_v14 }
 0x38a   :  { %1305 = vmatpush3.bf16.xpose.msra.mxu0 %v1400_v33 }
 0x38b   :  { %1306 = vmatprep.subr.bf16.mxu0 %v1401_v34 }
 0x38c   :  { %1295 = vmatmul.mubr.bf16.gmra.mrb[24].mxu0 %v1714_v16 }
 0x38d   :  { %1298 = vmatprep.mubr.bf16.mxu0 %v1716_v17 }
 0x392   :  { %1307 = vmatpush3.bf16.xpose.msra.mxu0 %v1401_v34 }
 0x393   :  { %1308 = vmatprep.subr.bf16.mxu0 %v1402_v35 }
 0x394   :  { %1299 = vmatmul.mubr.bf16.gmra.mrb[28].mxu0 %v1720_v19 }
 0x39a   :  { %1309 = vmatpush3.bf16.xpose.msra.mxu0 %v1402_v35 }
 0x39b   :  { %1310 = vmatprep.subr.bf16.mxu0 %v1403_v36 }
 0x3a2   :  { %1311 = vmatpush3.bf16.xpose.msra.mxu0 %v1403_v36 }
 0x3a3   :  { %1312 = vmatprep.subr.bf16.mxu0 %v1404_v37 }
 0x3aa   :  { %1313 = vmatpush3.bf16.xpose.msra.mxu0 %v1404_v37 }
 0x3ab   :  { %1314 = vmatprep.subr.bf16.mxu0 %v1405_v38 }
 0x3b2   :  { %1315 = vmatpush3.bf16.xpose.msra.mxu0 %v1405_v38 }
 0x3b3   :  { %1316 = vmatprep.subr.bf16.mxu0 %v1406_v39 }
 0x3ba   :  { %1317 = vmatpush3.bf16.xpose.msra.mxu0 %v1406_v39 }
 0x44f   :  { %v1288_v40 = vpop.f32.mrb[16].mxu0 }
 0x450   :  { %v686_v41 = vpop.f32.mrb[17].mxu0 }
 0x451   :  { %v1289_v42 = vpop.f32.mrb[18].mxu0 }
 0x452   :  { %v750_v43 = vpack.c.bf16 %v1289_v42, %v1288_v40  ;;  %v689_v44 = vpop.f32.mrb[19].mxu0 }
 0x453   :  { %v749_v45 = vpack.c.bf16 %v689_v44, %v686_v41 }
 0x455   :  { %1318 = vmatprep.mubr.bf16.mxu0 %v749_v45 }
 0x456   :  { %1319 = vmatmul.mubr.bf16.vlgmr.msra.gmra.mrb[32].mxu0 %v750_v43 }
 0x457   :  { %v1292_v46 = vpop.f32.mrb[20].mxu0 }
 0x458   :  { %v702_v47 = vpop.f32.mrb[21].mxu0 }
 0x459   :  { %v1293_v48 = vpop.f32.mrb[22].mxu0 }
 0x45a   :  { %v752_v49 = vpack.c.bf16 %v1293_v48, %v1292_v46  ;;  %v705_v50 = vpop.f32.mrb[23].mxu0 }
 0x45b   :  { %v751_v51 = vpack.c.bf16 %v705_v50, %v702_v47 }
 0x45d   :  { %1322 = vmatprep.mubr.bf16.mxu0 %v751_v51 }
 0x45e   :  { %1323 = vmatmul.mubr.bf16.gmra.mrb[36].mxu0 %v752_v49 }
 0x45f   :  { %v1296_v52 = vpop.f32.mrb[24].mxu0 }
 0x460   :  { %v718_v53 = vpop.f32.mrb[25].mxu0 }
 0x461   :  { %v1297_v54 = vpop.f32.mrb[26].mxu0 }
 0x462   :  { %v754_v55 = vpack.c.bf16 %v1297_v54, %v1296_v52  ;;  %v721_v56 = vpop.f32.mrb[27].mxu0 }
 0x463   :  { %v753_v57 = vpack.c.bf16 %v721_v56, %v718_v53 }
 0x465   :  { %1326 = vmatprep.mubr.bf16.mxu0 %v753_v57 }
 0x466   :  { %1327 = vmatmul.mubr.bf16.gmra.mrb[40].mxu0 %v754_v55 }
 0x467   :  { %v1300_v58 = vpop.f32.mrb[28].mxu0 }
 0x468   :  { %v734_v59 = vpop.f32.mrb[29].mxu0 }
 0x469   :  { %v1301_v32 = vpop.f32.mrb[30].mxu0 }
 0x46a   :  { %v756_v60 = vpack.c.bf16 %v1301_v32, %v1300_v58  ;;  %v737_v61 = vpop.f32.mrb[31].mxu0 }
 0x46b   :  { %v755_v62 = vpack.c.bf16 %v737_v61, %v734_v59 }
 0x46d   :  { %1330 = vmatprep.mubr.bf16.mxu0 %v755_v62 }
 0x46e   :  { %1331 = vmatmul.mubr.bf16.gmra.mrb[44].mxu0 %v756_v60 }
 0x529   :  { %v1320_v63 = vpop.f32.mrb[32].mxu0 }
 0x52a   :  { %v855_v0 = vpop.f32.mrb[33].mxu0 }
 0x52b   :  { %v1321_v1 = vpop.f32.mrb[34].mxu0 }
 0x52c   :  { %v919_v2 = vpack.c.bf16 %v1321_v1, %v1320_v63  ;;  %v858_v3 = vpop.f32.mrb[35].mxu0 }
 0x52d   :  { %v918_v4 = vpack.c.bf16 %v858_v3, %v855_v0 }
 0x52f   :  { %1334 = vmatprep.subr.bf16.mxu1 %v918_v4 }
 0x530   :  { %1335 = vmatpush3.bf16.msra.mxu1 %v918_v4 }
 0x531   :  { %v1324_v5 = vpop.f32.mrb[36].mxu0  ;;  %1336 = vmatprep.subr.bf16.mxu1 %v919_v2 }
 0x532   :  { %v871_v6 = vpop.f32.mrb[37].mxu0 }
 0x533   :  { %v1325_v7 = vpop.f32.mrb[38].mxu0 }
 0x534   :  { %v921_v8 = vpack.c.bf16 %v1325_v7, %v1324_v5  ;;  %v874_v9 = vpop.f32.mrb[39].mxu0  ;;  %1337 = vmatpush3.bf16.msra.mxu1 %v919_v2 }
 0x535   :  { %v920_v12 = vpack.c.bf16 %v874_v9, %v871_v6 }
 0x537   :  { %1338 = vmatprep.subr.bf16.mxu1 %v920_v12 }
 0x538   :  { %1339 = vmatpush3.bf16.msra.mxu1 %v920_v12 }
 0x539   :  { %v1328_v15 = vpop.f32.mrb[40].mxu0  ;;  %1340 = vmatprep.subr.bf16.mxu1 %v921_v8 }
 0x53a   :  { %v887_v18 = vpop.f32.mrb[41].mxu0 }
 0x53b   :  { %v1329_v20 = vpop.f32.mrb[42].mxu0 }
 0x53c   :  { %v923_v21 = vpack.c.bf16 %v1329_v20, %v1328_v15  ;;  %v890_v22 = vpop.f32.mrb[43].mxu0  ;;  %1341 = vmatpush3.bf16.msra.mxu1 %v921_v8 }
 0x53d   :  { %v922_v23 = vpack.c.bf16 %v890_v22, %v887_v18 }
 0x53f   :  { %1342 = vmatprep.subr.bf16.mxu1 %v922_v23 }
 0x540   :  { %1343 = vmatpush3.bf16.msra.mxu1 %v922_v23 }
 0x541   :  { %v1332_v24 = vpop.f32.mrb[44].mxu0  ;;  %1344 = vmatprep.subr.bf16.mxu1 %v923_v21 }
 0x542   :  { %v903_v25 = vpop.f32.mrb[45].mxu0 }
 0x543   :  { %v1333_v26 = vpop.f32.mrb[46].mxu0 }
 0x544   :  { %v925_v27 = vpack.c.bf16 %v1333_v26, %v1332_v24  ;;  %v906_v28 = vpop.f32.mrb[47].mxu0  ;;  %1345 = vmatpush3.bf16.msra.mxu1 %v923_v21 }
 0x545   :  { %v924_v29 = vpack.c.bf16 %v906_v28, %v903_v25 }
 0x547   :  { %1346 = vmatprep.subr.bf16.mxu1 %v924_v29 }
 0x548   :  { %1347 = vmatpush3.bf16.msra.mxu1 %v924_v29 }
 0x549   :  { %1348 = vmatprep.subr.bf16.mxu1 %v925_v27 }
 0x54c   :  { %1349 = vmatpush3.bf16.msra.mxu1 %v925_v27 }
 0x54f   :  { %1351 = vmatmul.mubr.bf16.vlgmr.msra.gmra.mrb[32].mxu1 %v1702_v10 }
 0x550   :  { %1354 = vmatprep.mubr.bf16.mxu1 %v1704_v11 }
 0x557   :  { %1355 = vmatmul.mubr.bf16.gmra.mrb[36].mxu1 %v1708_v13 }
 0x558   :  { %1358 = vmatprep.mubr.bf16.mxu1 %v1710_v14 }
 0x55f   :  { %1359 = vmatmul.mubr.bf16.gmra.mrb[40].mxu1 %v1714_v16 }
 0x560   :  { %1362 = vmatprep.mubr.bf16.mxu1 %v1716_v17 }
 0x567   :  { %1363 = vmatmul.mubr.bf16.gmra.mrb[44].mxu1 %v1720_v19 }
 0x622   :  { %v1352_v30 = vpop.f32.mrb[32].mxu1 }
 0x623   :  { %1025 = vst [vmem:[%s1791_s5 + $0x10] sm:$0xff] %v1352_v30  ;;  %v960_v31 = vpop.f32.mrb[33].mxu1 }
 0x624   :  { %1023 = vst [vmem:[%s1791_s5] sm:$0xff] %v960_v31  ;;  %v1353_v10 = vpop.f32.mrb[34].mxu1 }
 0x625   :  { %1026 = vst [vmem:[%s1791_s5 + $0x18] sm:$0xff] %v1353_v10  ;;  %v963_v11 = vpop.f32.mrb[35].mxu1 }
 0x626   :  { %1024 = vst [vmem:[%s1791_s5 + $0x8] sm:$0xff] %v963_v11 }
 0x62a   :  { %v1356_v13 = vpop.f32.mrb[36].mxu1 }
 0x62b   :  { %1029 = vst [vmem:[%s1791_s5 + $0x30] sm:$0xff] %v1356_v13  ;;  %v976_v14 = vpop.f32.mrb[37].mxu1 }
 0x62c   :  { %1027 = vst [vmem:[%s1791_s5 + $0x20] sm:$0xff] %v976_v14  ;;  %v1357_v16 = vpop.f32.mrb[38].mxu1 }
 0x62d   :  { %1030 = vst [vmem:[%s1791_s5 + $0x38] sm:$0xff] %v1357_v16  ;;  %v979_v17 = vpop.f32.mrb[39].mxu1 }
 0x62e   :  { %1028 = vst [vmem:[%s1791_s5 + $0x28] sm:$0xff] %v979_v17 }
 0x632   :  { %v1360_v19 = vpop.f32.mrb[40].mxu1 }
 0x633   :  { %1033 = vst [vmem:[%s1791_s5 + $0x50] sm:$0xff] %v1360_v19  ;;  %v992_v33 = vpop.f32.mrb[41].mxu1 }
 0x634   :  { %1031 = vst [vmem:[%s1791_s5 + $0x40] sm:$0xff] %v992_v33  ;;  %v1361_v34 = vpop.f32.mrb[42].mxu1 }
 0x635   :  { %1034 = vst [vmem:[%s1791_s5 + $0x58] sm:$0xff] %v1361_v34  ;;  %v995_v35 = vpop.f32.mrb[43].mxu1 }
 0x636   :  { %1032 = vst [vmem:[%s1791_s5 + $0x48] sm:$0xff] %v995_v35 }
 0x63a   :  { %v1364_v36 = vpop.f32.mrb[44].mxu1 }
 0x63b   :  { %1037 = vst [vmem:[%s1791_s5 + $0x70] sm:$0xff] %v1364_v36  ;;  %v1008_v37 = vpop.f32.mrb[45].mxu1 }
 0x63c   :  { %1035 = vst [vmem:[%s1791_s5 + $0x60] sm:$0xff] %v1008_v37  ;;  %v1365_v38 = vpop.f32.mrb[46].mxu1 }
 0x63d   :  { %1038 = vst [vmem:[%s1791_s5 + $0x78] sm:$0xff] %v1365_v38  ;;  %v1011_v39 = vpop.f32.mrb[47].mxu1 }
 0x63e   :  { %1036 = vst [vmem:[%s1791_s5 + $0x68] sm:$0xff] %v1011_v39 }
 0x63f   :  { %1043 = vsyncpa [#allocation3], 1 }
 0x640   :  { %1044 = vsyncpa [#allocation5], 1 }
 0x641   :  { %1045 = vsyncpa [#allocation8], 1 }

</bundles_post_ra>
